<compile_context>
chip_gen: v7x
topology: tpu7x:2x2x1
jax: 0.10.0
libtpu: 0.0.40
codegen_flags: <defaults>
</compile_context>

<pallas_src>
import jax
import jax.numpy as jnp
from jax.experimental import pallas as pl
from jax.experimental.pallas import tpu as pltpu

IGNORE_INDEX = 250


def _make_kernel(hw, tile_hw, tiles_per_shard):
    """Builds the kernel with static shape params closed over."""

    def kernel(logits_ref, tgt_ref, w_ref, out_ref, acc_ref):
        # logits_ref: (1, C, T)  input dtype (f32 or bf16)
        # tgt_ref   : (1, 1, T)  int32
        # w_ref     : (1, 1, T)  float32
        # out_ref   : (1, 1, 1)  float32 per-shard partial sum
        # acc_ref   : (1, T)     float32 VMEM scratch (vector accumulator)
        s = pl.program_id(0)   # shard (TensorCore split of the pixel tiles)
        n = pl.program_id(1)   # batch image
        i = pl.program_id(2)   # pixel tile within this shard

        @pl.when((n == 0) & (i == 0))
        def _():
            acc_ref[...] = jnp.zeros_like(acc_ref)

        x = logits_ref[0].astype(jnp.float32)        # (C, T)
        t = tgt_ref[0]                               # (1, T) int32
        w = w_ref[0].astype(jnp.float32)             # (1, T)

        # Numerically stable log-sum-exp over the class (sublane) axis.
        m = jnp.max(x, axis=0, keepdims=True)                               # (1, T)
        lse = jnp.log(jnp.sum(jnp.exp(x - m), axis=0, keepdims=True)) + m   # (1, T)

        # Target-class logit via one-hot select over the class axis.
        # Note: targets outside [0, C) other than IGNORE_INDEX would silently
        # select 0 (loss = lse); same caveat as v1, not checked here.
        cls = jax.lax.broadcasted_iota(jnp.int32, x.shape, 0)               # (C, T)
        tgt_logit = jnp.sum(jnp.where(cls == t, x, 0.0), axis=0, keepdims=True)

        # Validity: real pixel (masks the ragged tail of the last tile and any
        # fully-empty shard tile) AND not the ignore index.
        g = s * tiles_per_shard + i                  # global (unclamped) tile index
        start = g * tile_hw
        lane = jax.lax.broadcasted_iota(jnp.int32, t.shape, 1)              # (1, T)
        in_bounds = (start + lane) < hw
        valid = in_bounds & (t != IGNORE_INDEX)

        loss = lse - tgt_logit                       # (1, T) per-pixel CE
        acc_ref[...] += jnp.where(valid, loss * w, 0.0)

        # Final cross-lane reduce + scalar store only once per shard.
        @pl.when((n == pl.num_programs(1) - 1) & (i == pl.num_programs(2) - 1))
        def _():
            out_ref[...] = jnp.reshape(jnp.sum(acc_ref[...]), (1, 1, 1))

    return kernel


def _pick_tile_hw(hw, n_classes, itemsize,
                  target_bytes=2 * 1024 * 1024, max_tile=32768):
    """Lane-tile so the logits block is ~target_bytes, multiple of 128."""
    t = target_bytes // max(1, n_classes * itemsize)
    t = max(128, min(int(t), max_tile))
    t = (t // 128) * 128
    if hw <= t:
        return hw          # full extent (allowed even if not a multiple of 128)
    return t


def cross_entropy_2d_pixelwise_weighted(output, target, pixel_weight, *,
                                        tile_hw=None, num_shards=2):
    """output: (N, C, H, W); target: (N, H, W) int; pixel_weight: (N, H, W).

    Returns scalar float32 == mean(CE_none(output, target, ignore=250) * pixel_weight).
    """
    n, c, h, w = output.shape
    hw = h * w
    p = n * hw

    # Free reshapes only — no transpose, logits stay in native NCHW memory order.
    logits = output.reshape(n, c, hw)
    tgt = target.reshape(n, 1, hw).astype(jnp.int32)
    pw = pixel_weight.reshape(n, 1, hw).astype(jnp.float32)

    if tile_hw is None:
        tile_hw = _pick_tile_hw(hw, c, jnp.dtype(logits.dtype).itemsize)

    tiles_total = pl.cdiv(hw, tile_hw)
    num_shards = max(1, min(int(num_shards), tiles_total))
    tiles_per_shard = pl.cdiv(tiles_total, num_shards)

    def block_map(s, b, i):
        # Clamp the block index so fully-empty shard tiles re-read a valid
        # block (their contribution is masked to zero in the kernel).
        g = jnp.minimum(s * tiles_per_shard + i, tiles_total - 1)
        return (b, 0, g)

    kernel = _make_kernel(hw, tile_hw, tiles_per_shard)

    partials = pl.pallas_call(
        kernel,
        out_shape=jax.ShapeDtypeStruct((num_shards, 1, 1), jnp.float32),
        grid_spec=pltpu.PrefetchScalarGridSpec(
            num_scalar_prefetch=0,
            grid=(num_shards, n, tiles_per_shard),
            in_specs=[
                pl.BlockSpec((1, c, tile_hw), block_map),
                pl.BlockSpec((1, 1, tile_hw), block_map),
                pl.BlockSpec((1, 1, tile_hw), block_map),
            ],
            out_specs=pl.BlockSpec((1, 1, 1), lambda s, b, i: (s, 0, 0)),
            scratch_shapes=[pltpu.VMEM((1, tile_hw), jnp.float32)],
        ),
        compiler_params=pltpu.CompilerParams(
            # shard axis parallel (v7x megacore); batch/tile axes carry the
            # per-shard accumulator so they are arbitrary.
            dimension_semantics=("parallel", "arbitrary", "arbitrary"),
            vmem_limit_bytes=48 * 1024 * 1024,
        ),
    )(logits, tgt, pw)

    # mean over all N*H*W pixels (ignored pixels still count in the denominator,
    # matching reduction='none' followed by torch.mean).
    return (jnp.sum(partials) / jnp.float32(p)).astype(jnp.float32)


def _reference(output, target, pixel_weight):
    # pure-JAX reference of nn.CrossEntropyLoss(ignore_index=250, reduction='none')
    logp = jax.nn.log_softmax(output.astype(jnp.float32), axis=1)  # (N,C,H,W)
    tgt = target.astype(jnp.int32)
    valid = tgt != IGNORE_INDEX
    safe_t = jnp.where(valid, tgt, 0)
    gathered = jnp.take_along_axis(logp, safe_t[:, None, :, :], axis=1)[:, 0]
    loss = jnp.where(valid, -gathered, 0.0)
    return jnp.mean(loss * pixel_weight.astype(jnp.float32))


def _make_inputs(key, n, c, h, w):
    k1, k2, k3, k4 = jax.random.split(key, 4)
    output = jax.random.normal(k1, (n, c, h, w), dtype=jnp.float32)
    target = jax.random.randint(k2, (n, h, w), 0, c, dtype=jnp.int32)
    ignore_mask = jax.random.bernoulli(k3, 0.1, (n, h, w))
    target = jnp.where(ignore_mask, jnp.int32(IGNORE_INDEX), target)
    pixel_weight = jax.random.uniform(k4, (n, h, w), dtype=jnp.float32)
    return output, target, pixel_weight


if __name__ == "__main__":
    key = jax.random.PRNGKey(0)
    ka, kb = jax.random.split(key)

    # Case 1: small shape consistent with the module (single full tile).
    out1, tgt1, pw1 = _make_inputs(ka, 2, 4, 16, 16)
    loss1 = jax.block_until_ready(
        cross_entropy_2d_pixelwise_weighted(out1, tgt1, pw1))
    ref1 = jax.block_until_ready(_reference(out1, tgt1, pw1))
    assert jnp.allclose(loss1, ref1, atol=1e-5, rtol=1e-5), (loss1, ref1)

    # Case 2: H*W not a multiple of the tile + explicit 2-shard split
    # (exercises tail masking and the per-shard accumulators).
    out2, tgt2, pw2 = _make_inputs(kb, 2, 4, 20, 20)
    loss2 = jax.block_until_ready(
        cross_entropy_2d_pixelwise_weighted(out2, tgt2, pw2,
                                            tile_hw=128, num_shards=2))
    ref2 = jax.block_until_ready(_reference(out2, tgt2, pw2))
    assert jnp.allclose(loss2, ref2, atol=1e-5, rtol=1e-5), (loss2, ref2)

    print("KERNEL_OK")
</pallas_src>

<mosaic_0001>
module attributes {stable_mosaic.version = 11 : i64} {
  func.func @kernel(%arg0: i32, %arg1: i32, %arg2: i32, %arg3: memref<1x4x256xf32, #tpu.memory_space<vmem>>, %arg4: memref<1x1x256xi32, #tpu.memory_space<vmem>>, %arg5: memref<1x1x256xf32, #tpu.memory_space<vmem>>, %arg6: memref<1x1x1xf32, #tpu.memory_space<vmem>>, %arg7: memref<1x256xf32, #tpu.memory_space<vmem>>) attributes {dimension_semantics = [#tpu.dimension_semantics<parallel>, #tpu.dimension_semantics<arbitrary>, #tpu.dimension_semantics<arbitrary>], iteration_bounds = array<i64: 1, 2, 1>, scalar_prefetch = 0 : i64, scratch_operands = 1 : i64, tpu.core_type = #tpu.core_type<tc>, window_params = [{transform_indices = @transform_0, window_bounds = array<i64: 1, 4, 256>}, {transform_indices = @transform_1, window_bounds = array<i64: 1, 1, 256>}, {transform_indices = @transform_2, window_bounds = array<i64: 1, 1, 256>}, {transform_indices = @transform_3, window_bounds = array<i64: 1, 1, 1>}]} {
    %c0_i32 = arith.constant 0 : i32
    %0 = arith.cmpi eq, %arg1, %c0_i32 : i32
    %c0_i32_0 = arith.constant 0 : i32
    %1 = arith.cmpi eq, %arg2, %c0_i32_0 : i32
    %2 = arith.andi %0, %1 : i1
    %3 = arith.extui %2 : i1 to i32
    %c0_i32_1 = arith.constant 0 : i32
    %4 = arith.cmpi ne, %3, %c0_i32_1 : i32
    scf.if %4 {
      %cst_22 = arith.constant 0.000000e+00 : f32
      %50 = vector.broadcast %cst_22 : f32 to vector<1x256xf32>
      %c0_23 = arith.constant 0 : index
      %c0_24 = arith.constant 0 : index
      %51 = vector.load %arg7[%c0_23, %c0_24] : memref<1x256xf32, #tpu.memory_space<vmem>>, vector<1x256xf32>
      tpu.vector_store %arg7[%c0_23, %c0_24], %50 {strides = array<i32>} : memref<1x256xf32, #tpu.memory_space<vmem>>, vector<1x256xf32>,
    } else {
    }
    %c0 = arith.constant 0 : index
    %c0_2 = arith.constant 0 : index
    %c0_3 = arith.constant 0 : index
    %5 = vector.load %arg3[%c0, %c0_2, %c0_3] : memref<1x4x256xf32, #tpu.memory_space<vmem>>, vector<1x4x256xf32>
    %6 = vector.shape_cast %5 : vector<1x4x256xf32> to vector<4x256xf32>
    %c0_4 = arith.constant 0 : index
    %c0_5 = arith.constant 0 : index
    %c0_6 = arith.constant 0 : index
    %7 = vector.load %arg4[%c0_4, %c0_5, %c0_6] : memref<1x1x256xi32, #tpu.memory_space<vmem>>, vector<1x1x256xi32>
    %8 = vector.shape_cast %7 : vector<1x1x256xi32> to vector<1x256xi32>
    %c0_7 = arith.constant 0 : index
    %c0_8 = arith.constant 0 : index
    %c0_9 = arith.constant 0 : index
    %9 = vector.load %arg5[%c0_7, %c0_8, %c0_9] : memref<1x1x256xf32, #tpu.memory_space<vmem>>, vector<1x1x256xf32>
    %10 = vector.shape_cast %9 : vector<1x1x256xf32> to vector<1x256xf32>
    %cst = arith.constant dense<0xFF800000> : vector<256xf32>
    %11 = vector.multi_reduction <maximumf>, %6, %cst [0] : vector<4x256xf32> to vector<256xf32>
    %12 = vector.shape_cast %11 : vector<256xf32> to vector<1x256xf32>
    %13 = vector.broadcast %12 : vector<1x256xf32> to vector<4x256xf32>
    %14 = arith.subf %6, %13 : vector<4x256xf32>
    %15 = math.exp %14 : vector<4x256xf32>
    %cst_10 = arith.constant dense<0.000000e+00> : vector<256xf32>
    %16 = vector.multi_reduction <add>, %15, %cst_10 [0] : vector<4x256xf32> to vector<256xf32>
    %17 = vector.shape_cast %16 : vector<256xf32> to vector<1x256xf32>
    %18 = math.log %17 : vector<1x256xf32>
    %19 = arith.addf %18, %12 : vector<1x256xf32>
    %20 = tpu.iota {dimensions = array<i32: 0>} : vector<4x256xi32>
    %21 = vector.broadcast %8 : vector<1x256xi32> to vector<4x256xi32>
    %22 = arith.cmpi eq, %20, %21 : vector<4x256xi32>
    %cst_11 = arith.constant 0.000000e+00 : f32
    %23 = vector.broadcast %cst_11 : f32 to vector<4x256xf32>
    %24 = arith.select %22, %6, %23 : vector<4x256xi1>, vector<4x256xf32>
    %cst_12 = arith.constant dense<0.000000e+00> : vector<256xf32>
    %25 = vector.multi_reduction <add>, %24, %cst_12 [0] : vector<4x256xf32> to vector<256xf32>
    %26 = vector.shape_cast %25 : vector<256xf32> to vector<1x256xf32>
    %c1_i32 = arith.constant 1 : i32
    %27 = arith.muli %arg0, %c1_i32 : i32
    %28 = arith.addi %27, %arg2 : i32
    %c256_i32 = arith.constant 256 : i32
    %29 = arith.muli %28, %c256_i32 : i32
    %30 = tpu.iota {dimensions = array<i32: 1>} : vector<1x256xi32>
    %31 = vector.broadcast %29 : i32 to vector<1x256xi32>
    %32 = arith.addi %31, %30 : vector<1x256xi32>
    %c256_i32_13 = arith.constant 256 : i32
    %33 = vector.broadcast %c256_i32_13 : i32 to vector<1x256xi32>
    %34 = arith.cmpi slt, %32, %33 : vector<1x256xi32>
    %c250_i32 = arith.constant 250 : i32
    %35 = vector.broadcast %c250_i32 : i32 to vector<1x256xi32>
    %36 = arith.cmpi ne, %8, %35 : vector<1x256xi32>
    %37 = arith.andi %34, %36 : vector<1x256xi1>
    %38 = arith.subf %19, %26 : vector<1x256xf32>
    %c0_14 = arith.constant 0 : index
    %c0_15 = arith.constant 0 : index
    %39 = vector.load %arg7[%c0_14, %c0_15] : memref<1x256xf32, #tpu.memory_space<vmem>>, vector<1x256xf32>
    %40 = arith.mulf %38, %10 : vector<1x256xf32>
    %cst_16 = arith.constant 0.000000e+00 : f32
    %41 = vector.broadcast %cst_16 : f32 to vector<1x256xf32>
    %42 = arith.select %37, %40, %41 : vector<1x256xi1>, vector<1x256xf32>
    %43 = arith.addf %39, %42 : vector<1x256xf32>
    %c0_17 = arith.constant 0 : index
    %c0_18 = arith.constant 0 : index
    %44 = vector.load %arg7[%c0_17, %c0_18] : memref<1x256xf32, #tpu.memory_space<vmem>>, vector<1x256xf32>
    tpu.vector_store %arg7[%c0_17, %c0_18], %43 {strides = array<i32>} : memref<1x256xf32, #tpu.memory_space<vmem>>, vector<1x256xf32>,
    %c1_i32_19 = arith.constant 1 : i32
    %45 = arith.cmpi eq, %arg1, %c1_i32_19 : i32
    %c0_i32_20 = arith.constant 0 : i32
    %46 = arith.cmpi eq, %arg2, %c0_i32_20 : i32
    %47 = arith.andi %45, %46 : i1
    %48 = arith.extui %47 : i1 to i32
    %c0_i32_21 = arith.constant 0 : i32
    %49 = arith.cmpi ne, %48, %c0_i32_21 : i32
    scf.if %49 {
      %c0_22 = arith.constant 0 : index
      %c0_23 = arith.constant 0 : index
      %50 = vector.load %arg7[%c0_22, %c0_23] : memref<1x256xf32, #tpu.memory_space<vmem>>, vector<1x256xf32>
      %51 = vector.shape_cast %50 : vector<1x256xf32> to vector<1x1x256xf32>
      %cst_24 = arith.constant dense<0.000000e+00> : vector<1xf32>
      %52 = vector.multi_reduction <add>, %51, %cst_24 [1, 2] : vector<1x1x256xf32> to vector<1xf32>
      %53 = vector.shape_cast %52 : vector<1xf32> to vector<1x1x1xf32>
      %54 = vector.extract %53[0, 0, 0] : f32 from vector<1x1x1xf32>
      %55 = vector.broadcast %54 : f32 to vector<1x1x1xf32>
      %c0_25 = arith.constant 0 : index
      %c0_26 = arith.constant 0 : index
      %c0_27 = arith.constant 0 : index
      %56 = vector.load %arg6[%c0_25, %c0_26, %c0_27] : memref<1x1x1xf32, #tpu.memory_space<vmem>>, vector<1x1x1xf32>
      tpu.vector_store %arg6[%c0_25, %c0_26, %c0_27], %55 {strides = array<i32>} : memref<1x1x1xf32, #tpu.memory_space<vmem>>, vector<1x1x1xf32>,
    } else {
    }
    return
  }
  func.func @transform_0(%arg0: i32, %arg1: i32, %arg2: i32) -> (i32, i32, i32) {
    %c1_i32 = arith.constant 1 : i32
    %0 = arith.muli %arg0, %c1_i32 : i32
    %1 = arith.addi %0, %arg2 : i32
    %c0_i32 = arith.constant 0 : i32
    %2 = arith.minsi %1, %c0_i32 : i32
    %c0_i32_0 = arith.constant 0 : i32
    %c0_i32_1 = arith.constant 0 : i32
    return %arg1, %c0_i32_0, %2 : i32, i32, i32
  }
  func.func @transform_1(%arg0: i32, %arg1: i32, %arg2: i32) -> (i32, i32, i32) {
    %c1_i32 = arith.constant 1 : i32
    %0 = arith.muli %arg0, %c1_i32 : i32
    %1 = arith.addi %0, %arg2 : i32
    %c0_i32 = arith.constant 0 : i32
    %2 = arith.minsi %1, %c0_i32 : i32
    %c0_i32_0 = arith.constant 0 : i32
    %c0_i32_1 = arith.constant 0 : i32
    return %arg1, %c0_i32_0, %2 : i32, i32, i32
  }
  func.func @transform_2(%arg0: i32, %arg1: i32, %arg2: i32) -> (i32, i32, i32) {
    %c1_i32 = arith.constant 1 : i32
    %0 = arith.muli %arg0, %c1_i32 : i32
    %1 = arith.addi %0, %arg2 : i32
    %c0_i32 = arith.constant 0 : i32
    %2 = arith.minsi %1, %c0_i32 : i32
    %c0_i32_0 = arith.constant 0 : i32
    %c0_i32_1 = arith.constant 0 : i32
    return %arg1, %c0_i32_0, %2 : i32, i32, i32
  }
  func.func @transform_3(%arg0: i32, %arg1: i32, %arg2: i32) -> (i32, i32, i32) {
    %c0_i32 = arith.constant 0 : i32
    %c0_i32_0 = arith.constant 0 : i32
    %c0_i32_1 = arith.constant 0 : i32
    return %arg0, %c0_i32, %c0_i32_0 : i32, i32, i32
  }
}

</mosaic_0001>

<bundles_post_ra>
// kernel: tpu_custom_call.1
= control target key start
LH: loop header
LB: loop body
LE: loop exit
PB: predicated region body
PF: predicated region fallthrough
CT: control target
= control target key end

     0   :  { %8 = vsyncpa [#allocation4], 0  ;;  %s1138_s0 = inlined_call_operand.hbm [shape: f32[2,4,256], index: 0, kind: input, shape index: {}]   ;;  %s1139_s1 = inlined_call_operand.hbm [shape: s32[2,1,256], index: 1, kind: input, shape index: {}]   ;;  %s1140_s2 = inlined_call_operand.vmem [shape: f32[2,1,256], index: 2, kind: input, shape index: {}]   ;;  %s1141_s3 = inlined_call_operand.hbm [shape: f32[1,1,1], index: 3, kind: output, shape index: {}]  }
   0x1   :  { %10 = vsyncpa [#allocation4 + $0x1], 0 }
   0x2   :  { %11 = vsyncpa [#allocation7], 0 }
   0x3   :  { %13 = vsyncpa [#allocation7 + $0x1], 0 }
   0x4   :  { %14 = vsyncpa [#allocation5], 0  ;;  %s905_s12 = smov 0   ;;  %s907_s13 = smov 0  }
   0x5   :  { %s909_s14 = smov 0   ;;  %s911_s15 = smov 0  }
   0x6   :  { %s913_s16 = smov 0   ;;  %s915_s17 = smov 0  }
   0x7 LB: > { %s631_s18 = sadd.s32 4294967295, %s877_s17   ;;  %s35_s19 = sadd.s32 1, %s873_s16  ;;  %s877_s17 = sphi %s915_s17, %s20_s17   ;;  %s873_s16 = sphi %s913_s16, %s1156_s16   ;;  %s869_s15 = sphi %s911_s15, %s1155_s15   ;;  %s865_s14 = sphi %s909_s14, %s1154_s14   ;;  %s861_s13 = sphi %s907_s13, %s1153_s13   ;;  %s857_s12 = sphi %s905_s12, %s1152_s12  }
   0x8   : > { %p37_p0 = scmp.ge.s32.totalorder %s35_s19, 2  ;;  %s54_s20 = sadd.s32 1, %s865_s14 }
   0x9   : > { %p61_p1 = scmp.ne.s32.totalorder %s865_s14, %s861_s13  ;;  %p62_p2 = scmp.eq.s32.totalorder %s877_s17, 0 }
   0xa   : > { %s1158_s19 = smov (%p37_p0, %s35_s19), 0  ;;  %p67_p4 = scmp.ne.s32.totalorder %s861_s13, %s857_s12 }
   0xb   : > { %p941_p3 = por %p62_p2, %p61_p1  ;;  %s49_s22 = ssub.s32 %s873_s16, %s1158_s19 }
   0xc   : > { %p68_p5 = scmp.eq.s32.totalorder %s631_s18, 0  ;;  %p52_p6 = scmp.eq.s32.totalorder %s49_s22, 0 }
   0xd   : > { %p671_p8 = scmp.lt.s32.totalorder %s877_s17, 2  ;;  %s959_s25 = sand.u32 1, %s865_s14  }
   0xe   : > { %p950_p7 = por %p68_p5, %p67_p4  ;;  %s650_s26 = sshll.u32 %s873_s16, 7 }
   0xf   : > { %s956_s24 = scalar_select %p52_p6, %s865_s14, %s54_s20  }
  0x10   : > { %s1144_s23 = scalar_select %p950_p7, 1, 0 }
  0x11   : > { %s634_s27 = sshll.u32 %s959_s25, 3  ;;  %s966_s30 = scalar_lea.hbm %s1138_s0, %s650_s26 }
  0x12   : > { %s189_s4 = scalar_lea.vmem [#allocation3], %s634_s27  ;;  %p970_p9 = pnand %p671_p8, %p941_p3 }
  0x13   : > { %s202_s5 = sshll.u32 %s189_s4, 4  ;;  %s186_s7 = scalar_lea.sflag [#allocation4], %s959_s25  ;;  %s974_s5 = int_to_ptr.vmem [resolvable:$true] %s202_s5 }
  0x14   : > { %s733_s8 = scalar_lea.hbm %s966_s30, 128  ;;  %p735_p13 = pneg %p970_p9 }
  0x15   : > { %p734_p12 = scmp.ne.s32.totalorder %s966_s30, %s733_s8  ;;  %s738_s11 = scalar_lea.hbm %s1138_s0, 256 }
  0x16   : > { %p739_p2 = scmp.lt.u32.totalorder %s966_s30, %s1138_s0  ;;  %p740_p3 = scmp.lt.u32.totalorder %s738_s11, %s733_s8 }
  0x17   : > { %p736_p0 = pnand %p735_p13, %p734_p12  ;;  %p742_p5 = scmp.lt.u32.totalorder %s733_s8, %s966_s30 }
  0x18   : > { %p741_p4 = por %p740_p3, %p739_p2 }
  0x19   : > { %p737_p1 = pneg %p736_p0 }
  0x1a   : > { %p743_p6 = por %p742_p5, %p741_p4 }
  0x1c   : > { %p744_p8 = pnand %p743_p6, %p737_p1 }
  0x1e   : > { %747 = shalt.err (!%p744_p8)
}
  0x1f   : > { %s748_s21 = scalar_lea.vmem %s974_s5, 128  ;;  %s879_s22 = smov [#allocation3]  }
  0x20   : > { %p749_p12 = scmp.ne.s32.totalorder %s974_s5, %s748_s21  ;;  %s753_s26 = sshll.u32 %s879_s22, 4  ;;  %s754_s26 = int_to_ptr.vmem [resolvable:$false] %s753_s26 }
  0x21   : > { %s755_s27 = scalar_lea.vmem %s754_s26, 256  ;;  %p756_p11 = scmp.lt.s32.totalorder %s974_s5, %s754_s26 }
  0x22   : > { %p751_p0 = pnand %p749_p12, %p735_p13  ;;  %p757_p2 = scmp.lt.s32.totalorder %s755_s27, %s748_s21 }
  0x24   : > { %p752_p10 = pneg %p751_p0  ;;  %p758_p3 = por %p757_p2, %p756_p11 }
  0x26   : > { %p759_p4 = pnand %p758_p3, %p752_p10 }
  0x28   : > { %762 = shalt.err (!%p759_p4)
}
  0x29   : > { %667 = dma.hbm_to_vmem [thread:$0]  (!%p970_p9), %s966_s30, 128, %s974_s5, %s186_s7  }
  0x2a   : > { %p1146_p1 = scmp.lt.s32.totalorder %s877_s17, 3  ;;  %p1147_p5 = scmp.ge.s32.totalorder %s877_s17, 1 }
  0x2b   : > { %s637_s29 = sshll.u32 %s959_s25, 1  ;;  %s651_s4 = sshll.u32 %s873_s16, 5 }
  0x2c   : > { %p1008_p6 = pnand %p1147_p5, %p1146_p1  ;;  %s1017_s10 = scalar_lea.hbm %s1139_s1, %s651_s4 }
  0x2d   : > { %s213_s11 = scalar_lea.vmem [#allocation6], %s637_s29  ;;  %s210_s30 = scalar_lea.sflag [#allocation7], %s959_s25 }
  0x2e   : > { %s1148_s28 = scalar_select %p1008_p6, 1, 0 }
  0x2f   : > { %s226_s12 = sshll.u32 %s213_s11, 4  ;;  %s763_s5 = scalar_lea.hbm %s1017_s10, 32  ;;  %s227_s12 = int_to_ptr.vmem [resolvable:$true] %s226_s12 }
  0x30   : > { %p764_p10 = scmp.ne.s32.totalorder %s1017_s10, %s763_s5  ;;  %s768_s21 = scalar_lea.hbm %s1139_s1, 64 }
  0x31   : > { %p769_p12 = scmp.lt.u32.totalorder %s1017_s10, %s1139_s1  ;;  %p770_p0 = scmp.lt.u32.totalorder %s768_s21, %s763_s5 }
  0x32   : > { %p766_p11 = pnand %p764_p10, %p735_p13  ;;  %p772_p3 = scmp.lt.u32.totalorder %s763_s5, %s1017_s10 }
  0x33   : > { %p771_p2 = por %p770_p0, %p769_p12 }
  0x34   : > { %p767_p8 = pneg %p766_p11 }
  0x35   : > { %p773_p4 = por %p772_p3, %p771_p2 }
  0x37   : > { %p774_p1 = pnand %p773_p4, %p767_p8 }
  0x39   : > { %777 = shalt.err (!%p774_p1)
}
  0x3a   : > { %s778_s25 = scalar_lea.vmem %s227_s12, 32  ;;  %s880_s27 = smov [#allocation6]  }
  0x3b   : > { %p779_p5 = scmp.ne.s32.totalorder %s227_s12, %s778_s25  ;;  %s783_s29 = sshll.u32 %s880_s27, 4  ;;  %s784_s29 = int_to_ptr.vmem [resolvable:$false] %s783_s29 }
  0x3c   : > { %s785_s4 = scalar_lea.vmem %s784_s29, 64  ;;  %p786_p7 = scmp.lt.s32.totalorder %s227_s12, %s784_s29 }
  0x3d   : > { %p781_p10 = pnand %p779_p5, %p735_p13  ;;  %p787_p6 = scmp.lt.s32.totalorder %s785_s4, %s778_s25 }
  0x3f   : > { %p782_p11 = pneg %p781_p10  ;;  %p788_p0 = por %p787_p6, %p786_p7 }
  0x41   : > { %p789_p12 = pnand %p788_p0, %p782_p11 }
  0x43   : > { %792 = shalt.err (!%p789_p12)
}
  0x44   : > { %670 = dma.hbm_to_vmem [thread:$0]  (!%p970_p9), %s1017_s10, 32, %s227_s12, %s210_s30  }
  0x45   : > { %p1149_p8 = scmp.ne.s32.totalorder %s1148_s28, 0 }
  0x46   : > { %s255_s8 = sand.u32 (!%p1149_p8), 1, %s861_s13   ;;  %p1150_p13 = scmp.ne.s32.totalorder (!%p1149_p8), %s1144_s23, 0 }
  0x47   : > { %253 = sbr.rel (%p1149_p8) target bundleno = 412 (0x19c), region = 32  ;;  %s641_s9 = sshll.u32 (!%p1149_p8), %s255_s8, 3 }
  0x48   : > { %s256_s11 = scalar_lea.sflag (!%p1149_p8), [#allocation4], %s255_s8  ;;  %s259_s5 = scalar_lea.vmem (!%p1149_p8), [#allocation3], %s641_s9 }
  0x4e   : > { %844 = dma.done.wait (%p1150_p13), %s256_s11, 128  }
  0x4f   : > { %846 = vsyncadd (%p1150_p13), %s256_s11, 4294967168  ;;  %s642_s7 = sshll.u32 %s255_s8, 1  ;;  %s265_s20 = scalar_lea.sflag [#allocation7], %s255_s8 }
  0x50   : > { %s1046_s6 = scalar_lea.vmem [#allocation6], %s642_s7 }
  0x51   : > { %848 = dma.done.wait (%p1150_p13), %s265_s20, 32  }
  0x52   : > { %850 = vsyncadd (%p1150_p13), %s265_s20, 4294967264  ;;  %p314_p7 = scmp.lt.s32.totalorder %s869_s15, 1  ;;  %p325_p9 = scmp.eq.s32.totalorder %s869_s15, 0 }
  0x53   : > { %v331_v0 = vlaneseq (%p325_p9)  ;;  %v881_v1 = vmov (%p325_p9), 0.0  }
  0x54   : > { %s315_s28 = scalar_select %p314_p7, %s869_s15, 1 }
  0x55   : > { %330 = sbr.rel (!%p325_p9) target bundleno = 92 (0x5c), region = 44  ;;  %vm333_vm0 = vcmp.lt.s32.totalorder (%p325_p9), %v331_v0, 256 }
  0x56   : > { %s643_s10 = sshll.u32 %s315_s28, 1  ;;  %335 = vst.msk [vmem:[#allocation2] sm:$0x3] (%p325_p9), %vm333_vm0, %v881_v1 }
  0x57   : > { %s1058_s21 = scalar_lea.vmem %s1140_s2, %s643_s10 }
  0x5c PF: > { %v336_v2 = vld [vmem:[%s259_s5] sm:$0xff]  ;;  %vm342_vm1 = vcmask 1043456   ;;  %p481_p6 = scmp.eq.s32.totalorder %s869_s15, 1  ;;  %v387_v17 = vlaneseq  ;;  %v337_v24 = vld [vmem:[%s1046_s6] sm:$0x3]  ;;  %v882_v58 = vmov 0  }
  0x5d   : > { %v340_v3 = vcombine.high %v336_v2, %v336_v2  ;;  %v343_v4 = vsel %vm342_vm1, %v336_v2, -inf  ;;  %vm425_vm4 = vcmp.ne.s32.totalorder %v337_v24, 250  ;;  %v338_v61 = vld [vmem:[%s1058_s21] sm:$0x3]  ;;  %vm498_vm8 = vcmask (%p481_p6), 1040384  }
  0x5e   : > { %v344_v5 = vrot.slane %v343_v4, 4  ;;  %v1064_v20 = vshrl.u32 %v387_v17, 7  ;;  %v426_v59 = vsel %vm425_vm4, 1, %v882_v58  ;;  %vm478_vm7 = vcmp.lt.s32.totalorder %v387_v17, 256 }
  0x5f   : > { %v350_v6 = vsel %vm342_vm1, %v340_v3, -inf  ;;  %vm512_vm9 = vcmask (%p481_p6), 0  }
  0x60   : > { %v345_v7 = vmax.f32 %v343_v4, %v344_v5  ;;  %v351_v8 = vrot.slane %v350_v6, 4  ;;  %v1067_v23 = vsub.s32 0, %v1064_v20  ;;  %v1071_v25 = vsub.s32 1, %v1064_v20 }
  0x62   : > { %v346_v9 = vrot.slane %v345_v7, 2  ;;  %v352_v10 = vmax.f32 %v350_v6, %v351_v8  ;;  %v392_v26 = vrot.slane %v337_v24, %v1067_v23  ;;  %v396_v27 = vrot.slane %v337_v24, %v1071_v25 }
  0x63   : > { %v430_v1 = vrot.slane %v426_v59, %v1067_v23  ;;  %v434_v8 = vrot.slane %v426_v59, %v1071_v25 }
  0x64   : > { %v347_v11 = vmax.f32 %v345_v7, %v346_v9  ;;  %v353_v12 = vrot.slane %v352_v10, 2  ;;  %vm397_vm2 = vcmp.eq.s32.totalorder %v1064_v20, %v392_v26  ;;  %vm398_vm3 = vcmp.eq.s32.totalorder %v1064_v20, %v396_v27  ;;  %v441_v26 = vld [vmem:[#allocation2] sm:$0x3] }
  0x65   : > { %v399_v28 = vsel %vm397_vm2, %v336_v2, 0.0  ;;  %v400_v32 = vsel %vm398_vm3, %v340_v3, 0.0  ;;  %v446_v7 = vrot.slane %v338_v61, %v1067_v23  ;;  %vm435_vm5 = vcmp.ne.s32.totalorder %v430_v1, 0 }
  0x66   : > { %v348_v13 = vrot.slane %v347_v11, 1  ;;  %v354_v14 = vmax.f32 %v352_v10, %v353_v12  ;;  %v401_v34 = vsel %vm342_vm1, %v399_v28, 0.0  ;;  %v408_v38 = vsel %vm342_vm1, %v400_v32, 0.0 }
  0x67   : > { %v402_v39 = vrot.slane %v401_v34, 4  ;;  %v409_v42 = vrot.slane %v408_v38, 4  ;;  %vm436_vm6 = vcmp.ne.s32.totalorder %v434_v8, 0 }
  0x68   : > { %v349_v15 = vmax.f32 %v347_v11, %v348_v13  ;;  %v355_v16 = vrot.slane %v354_v14, 1  ;;  %v450_v11 = vrot.slane %v338_v61, %v1071_v25 }
  0x69   : > { %v403_v45 = vadd.f32 %v402_v39, %v401_v34  ;;  %v410_v48 = vadd.f32 %v409_v42, %v408_v38 }
  0x6a   : > { %v356_v18 = vmax.f32 %v354_v14, %v355_v16 }
  0x6b   : > { %v404_v51 = vrot.slane %v403_v45, 2  ;;  %v411_v53 = vrot.slane %v410_v48, 2 }
  0x6c   : > { %v359_v19 = vcombine.low %v349_v15, %v356_v18 }
  0x6d   : > { %v405_v54 = vadd.f32 %v404_v51, %v403_v45  ;;  %v412_v55 = vadd.f32 %v411_v53, %v410_v48 }
  0x6e   : > { %v361_v21 = vsub.f32 %v336_v2, %v359_v19  ;;  %v883_v2 = vmov 1966171168  }
  0x6f   : > { %v406_v56 = vrot.slane %v405_v54, 1  ;;  %v413_v57 = vrot.slane %v412_v55, 1  ;;  %v461_v3 = vunpack.c.l.s4 %v883_v2 }
  0x70   : > { %v362_v22 = vmul.f32 1.442695, %v361_v21 }
  0x71   : > { %v407_v63 = vadd.f32 %v406_v56, %v405_v54  ;;  %v414_v6 = vadd.f32 %v413_v57, %v412_v55  ;;  %v462_v12 = vunpack.c.0.s8 %v461_v3 }
  0x72   : > { %727 = vpow2.f32 %v362_v22 }
  0x73   : > { %v465_v21 = vsub.s32 %v462_v12, %v1064_v20 }
  0x7c   : > { %v728_v29 = vpop.eup %727 }
  0x7d   : > { %v365_v30 = vcombine.high %v728_v29, %v728_v29  ;;  %v367_v31 = vsel %vm342_vm1, %v728_v29, 0.0 }
  0x7e   : > { %v368_v33 = vrot.slane %v367_v31, 4 }
  0x7f   : > { %v374_v35 = vsel %vm342_vm1, %v365_v30, 0.0 }
  0x80   : > { %v369_v36 = vadd.f32 %v368_v33, %v367_v31  ;;  %v375_v37 = vrot.slane %v374_v35, 4 }
  0x82   : > { %v370_v40 = vrot.slane %v369_v36, 2  ;;  %v376_v41 = vadd.f32 %v375_v37, %v374_v35 }
  0x84   : > { %v371_v43 = vadd.f32 %v370_v40, %v369_v36  ;;  %v377_v44 = vrot.slane %v376_v41, 2 }
  0x86   : > { %v372_v46 = vrot.slane %v371_v43, 1  ;;  %v378_v47 = vadd.f32 %v377_v44, %v376_v41 }
  0x88   : > { %v373_v49 = vadd.f32 %v372_v46, %v371_v43  ;;  %v379_v50 = vrot.slane %v378_v47, 1 }
  0x8a   : > { %v380_v52 = vadd.f32 %v379_v50, %v378_v47  ;;  %729 = vlog2.f32 %v373_v49 }
  0x8c   : > { %731 = vlog2.f32 %v380_v52 }
  0x94   : > { %v730_v60 = vpop.eup %729 }
  0x95   : > { %v382_v62 = vmul.f32 0.6931472, %v730_v60 }
  0x96   : > { %v732_v0 = vpop.eup %731 }
  0x97   : > { %v384_v4 = vmul.f32 0.6931472, %v732_v0  ;;  %v385_v5 = vadd.f32 %v382_v62, %v349_v15 }
  0x99   : > { %v386_v9 = vadd.f32 %v384_v4, %v356_v18  ;;  %v439_v10 = vsub.f32 %v385_v5, %v407_v63 }
  0x9b   : > { %v440_v13 = vsub.f32 %v386_v9, %v414_v6  ;;  %v453_v14 = vmul.f32 %v446_v7, %v439_v10 }
  0x9d   : > { %v454_v16 = vmul.f32 %v450_v11, %v440_v13  ;;  %v455_v19 = vsel %vm435_vm5, %v453_v14, 0.0 }
  0x9f   : > { %v456_v22 = vsel %vm436_vm6, %v454_v16, 0.0 }
  0xa0   : > { %v459_v15 = vcombine.low %v455_v19, %v456_v22 }
  0xa2   : > { %v466_v24 = vrot.slane %v459_v15, %v465_v21  ;;  %485 = sbr.rel (!%p481_p6) target bundleno = 387 (0x183), region = 48 }
  0xa4   : > { %v473_v27 = vrot.slane %v466_v24, %v465_v21 }
  0xa6   : > { %v475_v18 = vadd.f32 %v473_v27, %v441_v26 }
  0xa8   : > { %480 = vst.msk [vmem:[#allocation2] sm:$0x3] %vm478_vm7, %v475_v18 }
  0xaf   : > { %v486_v28 = vld [vmem:[#allocation2] sm:$0x3] }
  0xb0   : > { %v491_v29 = vrot.slane %v486_v28, %v1067_v23  ;;  %v495_v30 = vrot.slane %v486_v28, %v1071_v25 }
  0xb2   : > { %v499_v31 = vsel %vm498_vm8, %v491_v29, 0.0  ;;  %v500_v20 = vsel %vm498_vm8, %v495_v30, 0.0 }
  0xb3   : > { %v501_v32 = vadd.f32 %v500_v20, %v499_v31 }
  0xb5   : > { %502 = vadd.xlane.f32.xlu0 %v501_v32 }
 0x142   : > { %v503_v33 = vpop.xlane.xlu0 %502 }
 0x143   : > { %v504_v34 = vrot.slane %v503_v33, 4 }
 0x145   : > { %v505_v35 = vadd.f32 %v504_v34, %v503_v33 }
 0x147   : > { %v506_v36 = vrot.slane %v505_v35, 2 }
 0x149   : > { %v507_v17 = vadd.f32 %v506_v36, %v505_v35 }
 0x14b   : > { %v508_v37 = vrot.slane %v507_v17, 1 }
 0x14d   : > { %v509_v38 = vadd.f32 %v508_v37, %v507_v17 }
 0x14f   : > { %654 = vpush %v509_v38 }
 0x180   : > { %s655_s15 = spop %654 }
 0x181   : > { %v511_v39 = vstv %s655_s15 }
 0x182   : > { %513 = vst.msk [vmem:[#allocation8] sm:$0x1] %vm512_vm9, %v511_v39 }
 0x183 PF: > { %p1094_p2 = scmp.eq.s32.totalorder %s631_s18, 1  ;;  %s884_s22 = smov [#allocation8]  }
 0x184   : > { %s523_s26 = sshll.u32 %s884_s22, 4  ;;  %s524_s26 = int_to_ptr.vmem [resolvable:$true] %s523_s26 }
 0x185   : > { %s793_s25 = scalar_lea.vmem %s524_s26, 16  ;;  %s799_s27 = scalar_lea.vmem %s524_s26, 32 }
 0x186   : > { %p794_p3 = scmp.ne.s32.totalorder %s524_s26, %s793_s25  ;;  %p800_p5 = scmp.lt.s32.totalorder %s524_s26, %s524_s26 }
 0x187   : > { %p801_p10 = scmp.lt.s32.totalorder %s799_s27, %s793_s25 }
 0x188   : > { %p795_p4 = pnand %p794_p3, %p1094_p2 }
 0x189   : > { %p802_p11 = por %p801_p10, %p800_p5 }
 0x18a   : > { %p796_p1 = pneg %p795_p4 }
 0x18c   : > { %p803_p0 = pnand %p802_p11, %p796_p1 }
 0x18e   : > { %806 = shalt.err (!%p803_p0)
}
 0x18f   : > { %s807_s4 = scalar_lea.hbm %s1141_s3, 16 }
 0x190   : > { %p808_p12 = scmp.ne.s32.totalorder %s1141_s3, %s807_s4  ;;  %p813_p7 = scmp.lt.u32.totalorder %s807_s4, %s1141_s3 }
 0x192   : > { %p809_p8 = pnand %p808_p12, %p1094_p2 }
 0x194   : > { %p810_p13 = pneg %p809_p8 }
 0x196   : > { %p815_p9 = pnand %p813_p7, %p810_p13 }
 0x198   : > { %818 = shalt.err (!%p815_p9)
}
 0x199   : > { %661 = dma.vmem_to_hbm [thread:$0]  (%p1094_p2), %s524_s26, 16, %s1141_s3, [#allocation5]  }
 0x19a   : > { %852 = dma.done.wait (%p1094_p2), [#allocation5], 16  }
 0x19b   : > { %854 = vsyncadd (%p1094_p2), [#allocation5], 4294967280 }
 0x19c PF: > { %s20_s17 = sadd.s32 1, %s877_s17   ;;  %s1152_s12 = smov %s861_s13 }
 0x19d   : > { %p17_p6 = scmp.ge.s32.totalorder %s20_s17, 4   ;;  %s1153_s13 = smov %s865_s14 }
 0x19e   : > { %s1154_s14 = smov %s956_s24  ;;  %s1155_s15 = smov %s873_s16 }
 0x19f   : > { %s1156_s16 = smov %s1158_s19  ;;  %19 = sbr.rel (!%p17_p6) target bundleno = 7 (0x7), region = 94 }
 0x1a6   :  { %536 = vsyncpa [#allocation4], 1 }
 0x1a7   :  { %538 = vsyncpa [#allocation4 + $0x1], 1 }
 0x1a8   :  { %539 = vsyncpa [#allocation7], 1 }
 0x1a9   :  { %541 = vsyncpa [#allocation7 + $0x1], 1 }
 0x1aa   :  { %542 = vsyncpa [#allocation5], 1 }
 0x1ab   :  { %544 = vsyncpa [#allocation5 + $0x1], 1 }

</bundles_post_ra>
